<compile_context>
chip_gen: v6e
topology: v6e:2x2x1
jax: 0.10.0
libtpu: 0.0.40
codegen_flags: <defaults>
</compile_context>

<pallas_src>
import jax
import jax.numpy as jnp
from jax.experimental import pallas as pl
from jax.experimental.pallas import tpu as pltpu


def prox_box_kernel(x_ref, parms_ref, w_ref, b_ref, out_ref):
    tn = out_ref.shape[-1]
    # One fused MXU dot produces [l_b | u_b] for this feature tile (f32 acc).
    lu = jnp.dot(parms_ref[...], w_ref[...],
                 preferred_element_type=jnp.float32) + b_ref[...].astype(jnp.float32)
    l_b = lu[:, :tn]                                     # lane-aligned split
    u_b = lu[:, tn:]
    x = x_ref[...].astype(jnp.float32)
    # Exact module formula: l_b + relu((u_b - l_b) - relu(u_b - x)).
    span = u_b - l_b
    inner = jnp.maximum(u_b - x, 0.0)
    out_ref[...] = (l_b + jnp.maximum(span - inner, 0.0)).astype(out_ref.dtype)


def _round_up(v, m):
    return ((v + m - 1) // m) * m


def prox_box_constraint(x, parms, w_l, b_l, w_u, b_u, *, tb=512, tn=1024):
    """x: (B, N), parms: (B, P), w_*: (P, N), b_*: (N,) or (1, N)."""
    B, N = x.shape
    P = parms.shape[1]
    b_l = jnp.asarray(b_l).reshape(1, N)
    b_u = jnp.asarray(b_u).reshape(1, N)

    # ---- tile-size selection -------------------------------------------------
    # Feature tile: always a multiple of 128 (lane-dense stores + free in-kernel
    # [l_b|u_b] split); edge feature block of x/out is masked by Pallas.
    tn_eff = min(tn, _round_up(N, 128))
    n_tiles = pl.cdiv(N, tn_eff)
    n_pad = n_tiles * tn_eff                      # weight/bias padded extent only
    # Batch tile: as large as possible; if it covers the whole batch use the
    # full dim (always legal), otherwise round to the dtype-dependent sublane
    # multiple (8 f32 / 16 bf16 / 32 int8).  No tb-halving for megacore -- on
    # v7x the feature axis supplies the second grid step when it exists.
    sub = max(8, 32 // jnp.dtype(x.dtype).itemsize,
              32 // jnp.dtype(parms.dtype).itemsize)
    tb_eff = min(tb, B)
    if tb_eff < B:
        tb_eff = max(sub, (tb_eff // sub) * sub)
    b_tiles = pl.cdiv(B, tb_eff)

    # ---- pack the two bound maps block-wise along the feature axis ------------
    # Feature-block j of the fused weight holds [W_l_j | W_u_j] contiguously so
    # one (P, 2*tn_eff) block feeds one fused dot.  Zero-padding is on the N
    # axis only (never the contraction axis).
    def pack(lo, hi):
        rows = lo.shape[0]
        lo_p = jnp.pad(lo, ((0, 0), (0, n_pad - N)))
        hi_p = jnp.pad(hi, ((0, 0), (0, n_pad - N)))
        lo4 = lo_p.reshape(rows, n_tiles, 1, tn_eff)
        hi4 = hi_p.reshape(rows, n_tiles, 1, tn_eff)
        return jnp.concatenate([lo4, hi4], axis=2).reshape(rows, 2 * n_pad)

    w_pk = pack(w_l, w_u)   # (P, 2*n_pad)
    b_pk = pack(b_l, b_u)   # (1, 2*n_pad)

    # Feature axis outer, batch axis inner -> weight/bias block index is
    # constant across the inner loop (DMA'd n_tiles times total).
    grid = (n_tiles, b_tiles)

    cost = pl.CostEstimate(
        flops=2 * B * P * 2 * N + 5 * B * N,
        transcendentals=0,
        bytes_accessed=(x.dtype.itemsize * 2 * B * N
                        + parms.dtype.itemsize * B * P
                        + w_pk.dtype.itemsize * w_pk.size
                        + b_pk.dtype.itemsize * b_pk.size),
    )

    return pl.pallas_call(
        prox_box_kernel,
        out_shape=jax.ShapeDtypeStruct((B, N), x.dtype),
        grid_spec=pltpu.PrefetchScalarGridSpec(
            num_scalar_prefetch=0,
            grid=grid,
            in_specs=[
                pl.BlockSpec((tb_eff, tn_eff), lambda j, i: (i, j)),     # x
                pl.BlockSpec((tb_eff, P), lambda j, i: (i, 0)),          # parms
                pl.BlockSpec((P, 2 * tn_eff), lambda j, i: (0, j)),      # [W_l|W_u]
                pl.BlockSpec((1, 2 * tn_eff), lambda j, i: (0, j)),      # [b_l|b_u]
            ],
            out_specs=pl.BlockSpec((tb_eff, tn_eff), lambda j, i: (i, j)),
        ),
        compiler_params=pltpu.CompilerParams(
            dimension_semantics=("parallel", "parallel")),
        cost_estimate=cost,
    )(x, parms, w_pk, b_pk)


if __name__ == "__main__":
    # Small shapes; exercise the non-tile-aligned (masked edge block) paths.
    B, P, N = 20, 8, 200

    key = jax.random.PRNGKey(0)
    kx, kp, kwl, kwu, kbl, kbu = jax.random.split(key, 6)

    x = jax.random.normal(kx, (B, N), dtype=jnp.float32) * 2.0
    parms = jax.random.normal(kp, (B, P), dtype=jnp.float32)

    # Deterministic affine "bound functions" (independent W_u: some bounds may
    # cross, which exercises the exact -- non-clamp -- formula).
    # TODO(synk): arbitrary user-supplied f_lower_bound/f_upper_bound callables
    # cannot be traced into the kernel in general; they are instantiated here
    # as affine maps so the vmapped bound evaluation fuses into the kernel.
    w_l = jax.random.normal(kwl, (P, N), dtype=jnp.float32) * 0.1
    w_u = jax.random.normal(kwu, (P, N), dtype=jnp.float32) * 0.1
    b_l = jax.random.normal(kbl, (1, N), dtype=jnp.float32) * 0.1 - 0.5
    b_u = b_l + 1.0 + jax.random.normal(kbu, (1, N), dtype=jnp.float32)

    out = prox_box_constraint(x, parms, w_l, b_l, w_u, b_u)
    out = jax.block_until_ready(out)

    # Pure-JAX reference (exact PyTorch formula).
    hi = jax.lax.Precision.HIGHEST
    l_b_ref = jnp.dot(parms, w_l, precision=hi) + b_l
    u_b_ref = jnp.dot(parms, w_u, precision=hi) + b_u
    ref = l_b_ref + jnp.maximum(
        u_b_ref - l_b_ref - jnp.maximum(u_b_ref - x, 0.0), 0.0)

    assert out.shape == (B, N) and out.dtype == x.dtype
    assert jnp.allclose(out, ref, atol=1e-4, rtol=1e-4)
    print("KERNEL_OK")
</pallas_src>

<mosaic_0001>
module attributes {stable_mosaic.version = 11 : i64} {
  func.func @prox_box_kernel(%arg0: i32, %arg1: i32, %arg2: memref<20x256xf32, #tpu.memory_space<vmem>>, %arg3: memref<20x8xf32, #tpu.memory_space<vmem>>, %arg4: memref<8x512xf32, #tpu.memory_space<vmem>>, %arg5: memref<1x512xf32, #tpu.memory_space<vmem>>, %arg6: memref<20x256xf32, #tpu.memory_space<vmem>>) attributes {dimension_semantics = [#tpu.dimension_semantics<parallel>, #tpu.dimension_semantics<parallel>], iteration_bounds = array<i64: 1, 1>, scalar_prefetch = 0 : i64, scratch_operands = 0 : i64, tpu.core_type = #tpu.core_type<tc>, window_params = [{transform_indices = @transform_0, window_bounds = array<i64: 20, 256>}, {transform_indices = @transform_1, window_bounds = array<i64: 20, 8>}, {transform_indices = @transform_2, window_bounds = array<i64: 8, 512>}, {transform_indices = @transform_3, window_bounds = array<i64: 1, 512>}, {transform_indices = @transform_4, window_bounds = array<i64: 20, 256>}]} {
    %c0 = arith.constant 0 : index
    %c0_0 = arith.constant 0 : index
    %0 = vector.load %arg3[%c0, %c0_0] : memref<20x8xf32, #tpu.memory_space<vmem>>, vector<20x8xf32>
    %c0_1 = arith.constant 0 : index
    %c0_2 = arith.constant 0 : index
    %1 = vector.load %arg4[%c0_1, %c0_2] : memref<8x512xf32, #tpu.memory_space<vmem>>, vector<8x512xf32>
    %cst = arith.constant dense<0.000000e+00> : vector<20x512xf32>
    %2 = tpu.matmul %0, %1, %cst {dimension_numbers = #tpu.dot_dimension_numbers<[1], [0], [0], [1], [0, 0, 1, 1], [], []>} : vector<20x8xf32>, vector<8x512xf32>, vector<20x512xf32> -> vector<20x512xf32>
    %c0_3 = arith.constant 0 : index
    %c0_4 = arith.constant 0 : index
    %3 = vector.load %arg5[%c0_3, %c0_4] : memref<1x512xf32, #tpu.memory_space<vmem>>, vector<1x512xf32>
    %4 = vector.broadcast %3 : vector<1x512xf32> to vector<20x512xf32>
    %5 = arith.addf %2, %4 : vector<20x512xf32>
    %6 = vector.extract_strided_slice %5 {offsets = [0, 0], sizes = [20, 256], strides = [1, 1]} : vector<20x512xf32> to vector<20x256xf32>
    %7 = vector.extract_strided_slice %5 {offsets = [0, 256], sizes = [20, 256], strides = [1, 1]} : vector<20x512xf32> to vector<20x256xf32>
    %c0_5 = arith.constant 0 : index
    %c0_6 = arith.constant 0 : index
    %8 = vector.load %arg2[%c0_5, %c0_6] : memref<20x256xf32, #tpu.memory_space<vmem>>, vector<20x256xf32>
    %9 = arith.subf %7, %6 : vector<20x256xf32>
    %10 = arith.subf %7, %8 : vector<20x256xf32>
    %cst_7 = arith.constant 0.000000e+00 : f32
    %11 = vector.broadcast %cst_7 : f32 to vector<20x256xf32>
    %12 = arith.maximumf %10, %11 : vector<20x256xf32>
    %13 = arith.subf %9, %12 : vector<20x256xf32>
    %cst_8 = arith.constant 0.000000e+00 : f32
    %14 = vector.broadcast %cst_8 : f32 to vector<20x256xf32>
    %15 = arith.maximumf %13, %14 : vector<20x256xf32>
    %16 = arith.addf %6, %15 : vector<20x256xf32>
    %c0_9 = arith.constant 0 : index
    %c0_10 = arith.constant 0 : index
    %17 = vector.load %arg6[%c0_9, %c0_10] : memref<20x256xf32, #tpu.memory_space<vmem>>, vector<20x256xf32>
    tpu.vector_store %arg6[%c0_9, %c0_10], %16 {strides = array<i32>} : memref<20x256xf32, #tpu.memory_space<vmem>>, vector<20x256xf32>,
    return
  }
  func.func @transform_0(%arg0: i32, %arg1: i32) -> (i32, i32) {
    %c0_i32 = arith.constant 0 : i32
    return %arg1, %arg0 : i32, i32
  }
  func.func @transform_1(%arg0: i32, %arg1: i32) -> (i32, i32) {
    %c0_i32 = arith.constant 0 : i32
    %c0_i32_0 = arith.constant 0 : i32
    return %arg1, %c0_i32 : i32, i32
  }
  func.func @transform_2(%arg0: i32, %arg1: i32) -> (i32, i32) {
    %c0_i32 = arith.constant 0 : i32
    %c0_i32_0 = arith.constant 0 : i32
    return %c0_i32, %arg0 : i32, i32
  }
  func.func @transform_3(%arg0: i32, %arg1: i32) -> (i32, i32) {
    %c0_i32 = arith.constant 0 : i32
    %c0_i32_0 = arith.constant 0 : i32
    return %c0_i32, %arg0 : i32, i32
  }
  func.func @transform_4(%arg0: i32, %arg1: i32) -> (i32, i32) {
    %c0_i32 = arith.constant 0 : i32
    return %arg1, %arg0 : i32, i32
  }
}

</mosaic_0001>

<bundles_post_ra>
// kernel: tpu_custom_call.1
= control target key start
LH: loop header
LB: loop body
LE: loop exit
PB: predicated region body
PF: predicated region fallthrough
CT: control target
= control target key end

     0   :  { %9 = vsyncpa [#allocation3], 0  ;;  %s429_s0 = inlined_call_operand.hbm [shape: f32[20,200], index: 0, kind: input, shape index: {}]   ;;  %s430_s1 = inlined_call_operand.vmem [shape: f32[20,8], index: 1, kind: input, shape index: {}]   ;;  %s431_s2 = inlined_call_operand.vmem [shape: f32[8,512], index: 2, kind: input, shape index: {}]   ;;  %s432_s3 = inlined_call_operand.vmem [shape: f32[1,512], index: 3, kind: input, shape index: {}]   ;;  %s433_s4 = inlined_call_operand.hbm [shape: f32[20,200], index: 4, kind: output, shape index: {}]  }
   0x1   :  { %10 = vsyncpa [#allocation4], 0  ;;  %s357_s15 = smov [#allocation2]  }
   0x2   :  { %s16_s16 = sshll.u32 %s357_s15, 4  ;;  %s17_s16 = int_to_ptr.vmem [resolvable:$true] %s16_s16 }
   0x3   :  { %s321_s17 = scalar_lea.vmem %s17_s16, 768  ;;  %p326_p1 = scmp.lt.s32.totalorder %s17_s16, %s17_s16 }
   0x4   :  { %p322_p0 = scmp.ne.s32.totalorder %s17_s16, %s321_s17  ;;  %p327_p2 = scmp.lt.s32.totalorder %s321_s17, %s321_s17 }
   0x6   :  { %p328_p3 = por %p327_p2, %p326_p1 }
   0x8   :  { %p329_p4 = pnand %p328_p3, %p322_p0 }
   0xa   :  { %332 = shalt.err (!%p329_p4)
}
   0xb   :  { %s358_s18 = smov 256   ;;  %s359_s19 = smov 16  }
   0xc   :  { %22 = dma.hbm_to_vmem [thread:$0]  %s429_s0, 768, %s17_s16, [#allocation3], %s358_s18, %s358_s18, %s359_s19  }
   0xd   :  { %353 = dma.done.wait [#allocation3], 768  }
   0xe   :  { %354 = vsyncadd [#allocation3], 4294966528  ;;  %v360_v0 = vmov 0.0   ;;  %v36_v1 = vld [vmem:[%s431_s2 + $0x8] sm:$0xff]  ;;  %v38_v2 = vld [vmem:[%s431_s2 + $0x18] sm:$0xff]  ;;  %vm61_vm0 = vcmask 64512   ;;  %v41_v8 = vlaneseq }
   0xf   :  { %135 = vmatprep.mubr.f32.mxu0 %v360_v0  ;;  %218 = vmatprep.mubr.f32.mxu1 %v360_v0  ;;  %v35_v3 = vld [vmem:[%s431_s2] sm:$0xff]  ;;  %v37_v4 = vld [vmem:[%s431_s2 + $0x10] sm:$0xff]  ;;  %v33_v6 = vld [vmem:[%s430_s1 + $0x8] sm:$0xff] }
  0x10   :  { %101 = vmatprep.subr.mxu0 %v36_v1  ;;  %184 = vmatprep.subr.mxu1 %v38_v2  ;;  %v32_v5 = vld [vmem:[%s430_s1] sm:$0xff]  ;;  %v34_v7 = vld [vmem:[%s430_s1 + $0x10] sm:$0xf]  ;;  %v42_v9 = vshrl.u32 %v41_v8, 7  ;;  %v238_v26 = vld [vmem:[#allocation2 + $0x8] sm:$0xff]  ;;  %s361_s1 = smov [#allocation5]  }
  0x11   :  { %102 = vmatpush1.msra.mxu0 %v35_v3  ;;  %185 = vmatpush1.msra.mxu1 %v37_v4  ;;  %v39_v12 = vld [vmem:[%s432_s3] sm:$0xf]  ;;  %v239_v35 = vld [vmem:[#allocation2 + $0x10] sm:$0xff]  ;;  %v240_v41 = vld [vmem:[#allocation2 + $0x18] sm:$0xff]  ;;  %s290_s3 = sshll.u32 %s361_s1, 4  ;;  %s291_s3 = int_to_ptr.vmem [resolvable:$true] %s290_s3 }
  0x12   :  { %302 = vmatmul.mubr.msk.f32.vlgmr.msra.gmra.mxu0 %vm61_vm0, %v32_v5  ;;  %305 = vmatmul.mubr.msk.f32.vlgmr.msra.gmra.mxu1 %vm61_vm0, %v32_v5  ;;  %v43_v10 = vsub.s32 0, %v42_v9  ;;  %v51_v11 = vsub.s32 2, %v42_v9  ;;  %v47_v13 = vsub.s32 1, %v42_v9  ;;  %v55_v14 = vsub.s32 3, %v42_v9  ;;  %v237_v21 = vld [vmem:[#allocation2] sm:$0xff]  ;;  %s333_s10 = scalar_lea.vmem %s291_s3, 768  ;;  %p338_p6 = scmp.lt.s32.totalorder %s291_s3, %s291_s3 }
  0x13   :  { %141 = vmatprep.mubr.f32.mxu0 %v360_v0  ;;  %224 = vmatprep.mubr.f32.mxu1 %v360_v0  ;;  %v241_v52 = vld [vmem:[#allocation2 + $0x20] sm:$0xf]  ;;  %v242_v63 = vld [vmem:[#allocation2 + $0x28] sm:$0xf]  ;;  %p334_p5 = scmp.ne.s32.totalorder %s291_s3, %s333_s10  ;;  %p339_p7 = scmp.lt.s32.totalorder %s333_s10, %s333_s10 }
  0x14   :  { %v44_v15 = vrot.slane %v39_v12, %v43_v10  ;;  %v52_v16 = vrot.slane %v39_v12, %v51_v11  ;;  %v48_v17 = vrot.slane %v39_v12, %v47_v13  ;;  %v56_v18 = vrot.slane %v39_v12, %v55_v14 }
  0x15   :  { %p340_p8 = por %p339_p7, %p338_p6 }
  0x16   :  { %303 = vmatmul.mubr.msk.f32.gmra.mxu0 %vm61_vm0, %v33_v6  ;;  %306 = vmatmul.mubr.msk.f32.gmra.mxu1 %vm61_vm0, %v33_v6 }
  0x17   :  { %147 = vmatprep.mubr.f32.mxu0 %v360_v0  ;;  %230 = vmatprep.mubr.f32.mxu1 %v360_v0  ;;  %p341_p9 = pnand %p340_p8, %p334_p5 }
  0x1a   :  { %304 = vmatmul.mubr.msk.f32.gmra.mxu0 %vm61_vm0, %v34_v7  ;;  %307 = vmatmul.mubr.msk.f32.gmra.mxu1 %vm61_vm0, %v34_v7 }
  0xd2   :  { %v137_v19 = vpop.f32.mrf.mxu0  ;;  %v220_v20 = vpop.f32.mrf.mxu1 }
  0xd3   :  { %v138_v22 = vadd.f32 %v137_v19, %v44_v15  ;;  %v221_v23 = vadd.f32 %v220_v20, %v52_v16 }
  0xd4   :  { %v139_v24 = vpop.f32.mrf.mxu0  ;;  %v222_v25 = vpop.f32.mrf.mxu1 }
  0xd5   :  { %v249_v27 = vsub.f32 %v221_v23, %v237_v21  ;;  %v140_v28 = vadd.f32 %v139_v24, %v48_v17  ;;  %v223_v29 = vadd.f32 %v222_v25, %v56_v18  ;;  %v243_v32 = vsub.f32 %v221_v23, %v138_v22 }
  0xd6   :  { %v143_v30 = vpop.f32.mrf.mxu0  ;;  %v226_v31 = vpop.f32.mrf.mxu1 }
  0xd7   :  { %v255_v33 = vmax.f32 %v249_v27, 0.0  ;;  %v250_v34 = vsub.f32 %v223_v29, %v238_v26  ;;  %v244_v36 = vsub.f32 %v223_v29, %v140_v28  ;;  %v144_v37 = vadd.f32 %v143_v30, %v44_v15 }
  0xd8   :  { %v227_v38 = vadd.f32 %v226_v31, %v52_v16  ;;  %v145_v39 = vpop.f32.mrf.mxu0  ;;  %v228_v40 = vpop.f32.mrf.mxu1 }
  0xd9   :  { %v261_v42 = vsub.f32 %v243_v32, %v255_v33  ;;  %v256_v43 = vmax.f32 %v250_v34, 0.0  ;;  %v146_v44 = vadd.f32 %v145_v39, %v48_v17  ;;  %v229_v45 = vadd.f32 %v228_v40, %v56_v18 }
  0xda   :  { %v251_v46 = vsub.f32 %v227_v38, %v239_v35  ;;  %v149_v47 = vpop.f32.mrf.mxu0  ;;  %v232_v48 = vpop.f32.mrf.mxu1  ;;  %v245_v53 = vsub.f32 %v227_v38, %v144_v37 }
  0xdb   :  { %v267_v49 = vmax.f32 %v261_v42, 0.0  ;;  %v262_v50 = vsub.f32 %v244_v36, %v256_v43  ;;  %v252_v51 = vsub.f32 %v229_v45, %v240_v41  ;;  %v150_v55 = vadd.f32 %v149_v47, %v44_v15 }
  0xdc   :  { %v257_v54 = vmax.f32 %v251_v46, 0.0  ;;  %v233_v56 = vadd.f32 %v232_v48, %v52_v16  ;;  %v151_v57 = vpop.f32.mrf.mxu0  ;;  %v234_v58 = vpop.f32.mrf.mxu1  ;;  %v246_v61 = vsub.f32 %v229_v45, %v146_v44 }
  0xdd   :  { %v273_v59 = vadd.f32 %v267_v49, %v138_v22  ;;  %v268_v60 = vmax.f32 %v262_v50, 0.0  ;;  %v258_v62 = vmax.f32 %v252_v51, 0.0  ;;  %v152_v2 = vadd.f32 %v151_v57, %v48_v17 }
  0xde   :  { %v263_v0 = vsub.f32 %v245_v53, %v257_v54  ;;  %v253_v1 = vsub.f32 %v233_v56, %v241_v52  ;;  %v235_v3 = vadd.f32 %v234_v58, %v56_v18  ;;  %v247_v7 = vsub.f32 %v233_v56, %v150_v55 }
  0xdf   :  { %279 = vst [vmem:[#allocation5] sm:$0xff] %v273_v59  ;;  %v274_v4 = vadd.f32 %v268_v60, %v140_v28  ;;  %v264_v5 = vsub.f32 %v246_v61, %v258_v62 }
  0xe0   :  { %v269_v6 = vmax.f32 %v263_v0, 0.0  ;;  %v259_v8 = vmax.f32 %v253_v1, 0.0  ;;  %v254_v9 = vsub.f32 %v235_v3, %v242_v63  ;;  %v248_v13 = vsub.f32 %v235_v3, %v152_v2 }
  0xe1   :  { %280 = vst [vmem:[#allocation5 + $0x8] sm:$0xff] %v274_v4  ;;  %v270_v10 = vmax.f32 %v264_v5, 0.0 }
  0xe2   :  { %v275_v11 = vadd.f32 %v269_v6, %v144_v37  ;;  %v265_v12 = vsub.f32 %v247_v7, %v259_v8  ;;  %v260_v14 = vmax.f32 %v254_v9, 0.0 }
  0xe3   :  { %v276_v15 = vadd.f32 %v270_v10, %v146_v44 }
  0xe4   :  { %281 = vst [vmem:[#allocation5 + $0x10] sm:$0xff] %v275_v11  ;;  %v271_v16 = vmax.f32 %v265_v12, 0.0  ;;  %v266_v19 = vsub.f32 %v248_v13, %v260_v14 }
  0xe5   :  { %282 = vst [vmem:[#allocation5 + $0x18] sm:$0xff] %v276_v15 }
  0xe6   :  { %v277_v17 = vadd.f32 %v271_v16, %v150_v55  ;;  %v272_v18 = vmax.f32 %v266_v19, 0.0 }
  0xe8   :  { %283 = vst [vmem:[#allocation5 + $0x20] sm:$0xf] %v277_v17  ;;  %v278_v20 = vadd.f32 %v272_v18, %v152_v2 }
  0xea   :  { %284 = vst [vmem:[#allocation5 + $0x28] sm:$0xf] %v278_v20 }
  0xeb   :  { %344 = shalt.err (!%p341_p9)
}
  0xec   :  { %296 = dma.vmem_to_hbm [thread:$0]  %s291_s3, 768, %s433_s4, [#allocation4], %s358_s18, %s358_s18, %s359_s19  }
  0xed   :  { %355 = dma.done.wait [#allocation4], 768  }
  0xee   :  { %356 = vsyncadd [#allocation4], 4294966528 }
  0xef   :  { %300 = vsyncpa [#allocation3], 1 }
  0xf0   :  { %301 = vsyncpa [#allocation4], 1 }

</bundles_post_ra>
